<compile_context>
chip_gen: v7x
topology: tpu7x:2x2x1
jax: 0.10.0
libtpu: 0.0.40
codegen_flags: <defaults>
</compile_context>

<pallas_src>
import functools

import numpy as np
import jax
import jax.numpy as jnp
from jax import lax
from jax.experimental import pallas as pl
from jax.experimental.pallas import tpu as pltpu


def _ntxent_tile_kernel(rows_ref, colsT_ref, pos_ref, out_ref, m_ref, l_ref,
                        *, tq, tn, n_valid):
    """One (TQ, TN) tile of the (N_pad, N_pad) logits matrix, online LSE."""
    qi = pl.program_id(0)          # row-block index ("parallel")
    ci = pl.program_id(1)          # column-block index (reduction, "arbitrary")

    @pl.when(ci == 0)
    def _init():
        m_ref[...] = jnp.full_like(m_ref, -jnp.inf)
        l_ref[...] = jnp.zeros_like(l_ref)

    # (TQ, D) bf16 x (D, TN) bf16 -> f32 on the MXU.  1/temperature is folded
    # into the LHS in the wrapper, so the tile needs no extra scale pass.
    logits = jnp.dot(rows_ref[...], colsT_ref[...],
                     preferred_element_type=jnp.float32)

    # Mask the self-similarity (global diagonal) and padded columns with
    # small broadcast iotas (no N x N index tensors, no captured constants).
    row_ids = lax.broadcasted_iota(jnp.int32, (tq, 1), 0) + qi * tq
    col_ids = lax.broadcasted_iota(jnp.int32, (1, tn), 1) + ci * tn
    invalid = jnp.logical_or(row_ids == col_ids, col_ids >= n_valid)
    logits = jnp.where(invalid, -1e30, logits)

    # Online logsumexp update for this column block.
    tile_max = jnp.max(logits, axis=-1, keepdims=True)          # (TQ, 1)
    m_new = jnp.maximum(m_ref[...], tile_max)
    alpha = jnp.exp(m_ref[...] - m_new)
    l_ref[...] = l_ref[...] * alpha + jnp.sum(jnp.exp(logits - m_new),
                                              axis=-1, keepdims=True)
    m_ref[...] = m_new

    @pl.when(ci == pl.num_programs(1) - 1)
    def _finalize():
        # per-row loss: logsumexp_{j != i}(sim_ij / T) - sim_{i,partner(i)} / T
        # (the positive logit was precomputed in f32 in the wrapper).
        out_ref[...] = m_ref[...] + jnp.log(l_ref[...]) - pos_ref[...]


def _round_up(x, m):
    return ((x + m - 1) // m) * m


def _tile_vmem_bytes(tq, tn, d, mm_bytes):
    stream = 2 * (tq * d + d * tn) * mm_bytes   # double-buffered lhs / rhs tiles
    small = 6 * tq * 4                          # pos + out blocks + m/l scratch (f32)
    interm = 3 * tq * tn * 4                    # f32 logits / exp temporaries
    return stream + small + interm


# Budget for the resident tile working set.  v7x has only 64 MiB of physical
# VMEM per TensorCore (vs 128 MiB on v5e/v6e) -> stay well under that so one
# heuristic fits every generation.
_VMEM_BUDGET = 44 * 1024 * 1024


def _select_tiling(n, d, mm_bytes):
    """Return (n_pad, tq, tn)."""
    # Padded problem size: sublane-aligned for tiny N, 16-aligned (>= 2 row
    # blocks for the v7x megacore) for small N, 256-aligned otherwise
    # (< 256 wasted rows/cols, lane/MXU aligned).
    if n <= 16:
        n_pad = _round_up(n, 8)
    elif n <= 256:
        n_pad = _round_up(n, 16)
    else:
        n_pad = _round_up(n, 256)

    # Row tile: as large as possible (arithmetic intensity of the streamed
    # (D, TN) tile ~ TQ flops/byte in bf16) while keeping >= 2 row blocks so
    # the "parallel" axis splits across both v7x TensorCores.
    tq = 256 if n_pad >= 512 else max(8, n_pad // 2)

    # Column tile: multiples of 256 (2x256x256 MXU on v6e/v7x), grown while
    # the double-buffered stream + f32 intermediates fit the VMEM budget.
    if n_pad <= 256:
        tn = n_pad
    else:
        tn = 256
        for cand in (512, 1024):
            if n_pad % cand == 0 and _tile_vmem_bytes(tq, cand, d, mm_bytes) <= _VMEM_BUDGET:
                tn = cand

    # Very large D: shrink tiles until the working set fits.
    while _tile_vmem_bytes(tq, tn, d, mm_bytes) > _VMEM_BUDGET:
        if tn % 256 == 0 and n_pad % (tn // 2) == 0:
            tn //= 2
        elif tq >= 16 and tq % 16 == 0:
            tq //= 2
        else:
            break
    return n_pad, tq, tn


def ntxent_loss(zis, zjs, temperature, use_cosine_similarity,
                *, block_q=None, block_n=None, mm_dtype=jnp.bfloat16):
    """Pallas implementation of NTXentLoss.forward(zis, zjs)."""
    b, d = zis.shape
    n = 2 * b
    inv_t = 1.0 / float(temperature)

    # O(N*D) prep stays in XLA (negligible vs the O(N^2*D) kernel work).
    reps = jnp.concatenate([zjs, zis], axis=0).astype(jnp.float32)    # (N, D)
    if use_cosine_similarity:
        # Row pre-normalization so the sim matmul directly yields cosine
        # similarity (norms clamped at 1e-8, matching torch up to degenerate
        # near-zero rows).
        norm = jnp.sqrt(jnp.sum(reps * reps, axis=-1, keepdims=True))
        reps = reps / jnp.maximum(norm, 1e-8)

    # Positive logit per row (partner = reps rolled by B), f32, scaled by 1/T.
    partner = jnp.roll(reps, shift=-b, axis=0)
    pos = jnp.sum(reps * partner, axis=-1, keepdims=True) * inv_t     # (N, 1) f32

    mm_bytes = jnp.dtype(mm_dtype).itemsize
    if block_q is None and block_n is None:
        n_pad, tq, tn = _select_tiling(n, d, mm_bytes)
    else:
        tq, tn = int(block_q), int(block_n)
        n_pad = n
        assert n % tq == 0 and n % tn == 0, (n, tq, tn)
        assert tq == n or tq % 8 == 0, tq
        assert tn == n or tn % 128 == 0, tn

    # Matmul operands: 1/T folded into the LHS, cast to bf16 (native MXU
    # dtype on v5e/v6e/v7x, halves the streamed bytes); accumulate in f32.
    rows_mm = (reps * inv_t).astype(mm_dtype)                         # (N, D)
    colsT_mm = reps.T.astype(mm_dtype)                                # (D, N)

    pad = n_pad - n
    if pad:
        rows_mm = jnp.pad(rows_mm, ((0, pad), (0, 0)))
        colsT_mm = jnp.pad(colsT_mm, ((0, 0), (0, pad)))
        pos = jnp.pad(pos, ((0, pad), (0, 0)))

    grid = (n_pad // tq, n_pad // tn)
    kernel = functools.partial(_ntxent_tile_kernel, tq=tq, tn=tn, n_valid=n)

    footprint = _tile_vmem_bytes(tq, tn, d, mm_bytes)
    vmem_limit = int(min(48 * 1024 * 1024, max(24 * 1024 * 1024, 2 * footprint)))

    cost = pl.CostEstimate(
        flops=2 * n_pad * n_pad * d,
        transcendentals=n_pad * n_pad,
        bytes_accessed=int(mm_bytes * d * n_pad * (1 + grid[0]) + 8 * n_pad),
    )

    per_row = pl.pallas_call(
        kernel,
        out_shape=jax.ShapeDtypeStruct((n_pad, 1), jnp.float32),
        grid_spec=pltpu.PrefetchScalarGridSpec(
            num_scalar_prefetch=0,
            grid=grid,
            in_specs=[
                pl.BlockSpec((tq, d), lambda qi, ci: (qi, 0)),   # row tile (bf16)
                pl.BlockSpec((d, tn), lambda qi, ci: (0, ci)),   # streamed col tile
                pl.BlockSpec((tq, 1), lambda qi, ci: (qi, 0)),   # positives (f32)
            ],
            out_specs=pl.BlockSpec((tq, 1), lambda qi, ci: (qi, 0)),
            scratch_shapes=[
                pltpu.VMEM((tq, 1), jnp.float32),   # running max
                pltpu.VMEM((tq, 1), jnp.float32),   # running sum of exp
            ],
        ),
        compiler_params=pltpu.CompilerParams(
            dimension_semantics=("parallel", "arbitrary"),
            vmem_limit_bytes=vmem_limit),
        cost_estimate=cost,
    )(rows_mm, colsT_mm, pos)

    return jnp.sum(per_row[:n, 0]) / n


def _reference_loss_numpy(zis, zjs, temperature, use_cosine_similarity):
    """Literal numpy port of the PyTorch forward (for verification)."""
    zis = np.asarray(zis, dtype=np.float64)
    zjs = np.asarray(zjs, dtype=np.float64)
    b = zis.shape[0]
    n = 2 * b
    reps = np.concatenate([zjs, zis], axis=0)
    if use_cosine_similarity:
        norm = np.linalg.norm(reps, axis=-1, keepdims=True)
        sim = (reps @ reps.T) / np.maximum(norm * norm.T, 1e-8)
    else:
        sim = reps @ reps.T
    l_pos = np.diagonal(sim, offset=b)
    r_pos = np.diagonal(sim, offset=-b)
    positives = np.concatenate([l_pos, r_pos]).reshape(n, 1)
    mask = (1 - (np.eye(n) + np.eye(n, n, k=-b) + np.eye(n, n, k=b))).astype(bool)
    negatives = sim[mask].reshape(n, -1)
    logits = np.concatenate([positives, negatives], axis=1) / temperature
    # CrossEntropyLoss(reduction='sum') with labels == 0
    m = logits.max(axis=1, keepdims=True)
    lse = (m + np.log(np.exp(logits - m).sum(axis=1, keepdims=True)))[:, 0]
    loss = np.sum(lse - logits[:, 0])
    return loss / n


if __name__ == "__main__":
    temperature = 0.5
    key = jax.random.PRNGKey(0)

    ok = True
    # (batch, feat_dim, block_q, block_n, mm_dtype, tol)
    #   * config 1: tiny shapes, exact f32 matmul path (tight tolerance)
    #   * config 2: same shapes through the default bf16 MXU path
    #   * config 3: N=200 -> exercises the padded-column masking path
    #   * config 4: forced multi-row-block, multi-column-block grid to
    #     exercise the online logsumexp accumulation across column blocks
    configs = [
        (8, 32, None, None, jnp.float32, 1e-4),
        (8, 32, None, None, jnp.bfloat16, 1e-2),
        (100, 48, None, None, jnp.bfloat16, 1e-2),
        (128, 32, 64, 128, jnp.bfloat16, 1e-2),
    ]
    for bsz, dim, tq, tn, mmdt, tol in configs:
        k1, k2 = jax.random.split(jax.random.fold_in(key, bsz))
        zis = jax.random.normal(k1, (bsz, dim), dtype=jnp.float32)
        zjs = jax.random.normal(k2, (bsz, dim), dtype=jnp.float32)
        for use_cos in (True, False):
            loss = jax.block_until_ready(
                ntxent_loss(zis, zjs, temperature, use_cos,
                            block_q=tq, block_n=tn, mm_dtype=mmdt))
            ref = _reference_loss_numpy(zis, zjs, temperature, use_cos)
            if not np.allclose(np.asarray(loss), ref, rtol=tol, atol=tol):
                ok = False
                print(f"mismatch B={bsz} use_cosine={use_cos} dtype={mmdt}: "
                      f"pallas={float(loss)} ref={ref}")

    if ok:
        print("KERNEL_OK")
</pallas_src>

<mosaic_0001>
module attributes {stable_mosaic.version = 11 : i64} {
  func.func @_ntxent_tile_kernel(%arg0: i32, %arg1: i32, %arg2: memref<8x32xf32, #tpu.memory_space<vmem>>, %arg3: memref<32x16xf32, #tpu.memory_space<vmem>>, %arg4: memref<8x1xf32, #tpu.memory_space<vmem>>, %arg5: memref<8x1xf32, #tpu.memory_space<vmem>>, %arg6: memref<8x1xf32, #tpu.memory_space<vmem>>, %arg7: memref<8x1xf32, #tpu.memory_space<vmem>>) attributes {dimension_semantics = [#tpu.dimension_semantics<parallel>, #tpu.dimension_semantics<arbitrary>], iteration_bounds = array<i64: 2, 1>, scalar_prefetch = 0 : i64, scratch_operands = 2 : i64, tpu.core_type = #tpu.core_type<tc>, window_params = [{transform_indices = @transform_0, window_bounds = array<i64: 8, 32>}, {transform_indices = @transform_1, window_bounds = array<i64: 32, 16>}, {transform_indices = @transform_2, window_bounds = array<i64: 8, 1>}, {transform_indices = @transform_3, window_bounds = array<i64: 8, 1>}]} {
    %c0_i32 = arith.constant 0 : i32
    %0 = arith.cmpi eq, %arg1, %c0_i32 : i32
    %1 = arith.extui %0 : i1 to i32
    %c0_i32_0 = arith.constant 0 : i32
    %2 = arith.cmpi ne, %1, %c0_i32_0 : i32
    scf.if %2 {
      %cst_20 = arith.constant 0xFF800000 : f32
      %43 = vector.broadcast %cst_20 : f32 to vector<8x1xf32>
      %c0_21 = arith.constant 0 : index
      %c0_22 = arith.constant 0 : index
      %44 = vector.load %arg6[%c0_21, %c0_22] : memref<8x1xf32, #tpu.memory_space<vmem>>, vector<8x1xf32>
      tpu.vector_store %arg6[%c0_21, %c0_22], %43 {strides = array<i32>} : memref<8x1xf32, #tpu.memory_space<vmem>>, vector<8x1xf32>,
      %cst_23 = arith.constant 0.000000e+00 : f32
      %45 = vector.broadcast %cst_23 : f32 to vector<8x1xf32>
      %c0_24 = arith.constant 0 : index
      %c0_25 = arith.constant 0 : index
      %46 = vector.load %arg7[%c0_24, %c0_25] : memref<8x1xf32, #tpu.memory_space<vmem>>, vector<8x1xf32>
      tpu.vector_store %arg7[%c0_24, %c0_25], %45 {strides = array<i32>} : memref<8x1xf32, #tpu.memory_space<vmem>>, vector<8x1xf32>,
    } else {
    }
    %c0 = arith.constant 0 : index
    %c0_1 = arith.constant 0 : index
    %3 = vector.load %arg2[%c0, %c0_1] : memref<8x32xf32, #tpu.memory_space<vmem>>, vector<8x32xf32>
    %c0_2 = arith.constant 0 : index
    %c0_3 = arith.constant 0 : index
    %4 = vector.load %arg3[%c0_2, %c0_3] : memref<32x16xf32, #tpu.memory_space<vmem>>, vector<32x16xf32>
    %cst = arith.constant dense<0.000000e+00> : vector<8x16xf32>
    %5 = tpu.matmul %3, %4, %cst {dimension_numbers = #tpu.dot_dimension_numbers<[1], [0], [0], [1], [0, 0, 1, 1], [], []>} : vector<8x32xf32>, vector<32x16xf32>, vector<8x16xf32> -> vector<8x16xf32>
    %6 = tpu.iota {dimensions = array<i32: 0>} : vector<8x1xi32>
    %c8_i32 = arith.constant 8 : i32
    %7 = arith.muli %arg0, %c8_i32 : i32
    %8 = vector.broadcast %7 : i32 to vector<8x1xi32>
    %9 = arith.addi %6, %8 : vector<8x1xi32>
    %10 = tpu.iota {dimensions = array<i32: 1>} : vector<1x16xi32>
    %c16_i32 = arith.constant 16 : i32
    %11 = arith.muli %arg1, %c16_i32 : i32
    %12 = vector.broadcast %11 : i32 to vector<1x16xi32>
    %13 = arith.addi %10, %12 : vector<1x16xi32>
    %14 = vector.broadcast %9 : vector<8x1xi32> to vector<8x16xi32>
    %15 = vector.broadcast %13 : vector<1x16xi32> to vector<8x16xi32>
    %16 = arith.cmpi eq, %14, %15 : vector<8x16xi32>
    %c16_i32_4 = arith.constant 16 : i32
    %17 = vector.broadcast %c16_i32_4 : i32 to vector<1x16xi32>
    %18 = arith.cmpi sge, %13, %17 : vector<1x16xi32>
    %19 = vector.broadcast %18 : vector<1x16xi1> to vector<8x16xi1>
    %20 = arith.ori %16, %19 : vector<8x16xi1>
    %cst_5 = arith.constant -1.000000e+30 : f32
    %21 = vector.broadcast %cst_5 : f32 to vector<8x16xf32>
    %22 = arith.select %20, %21, %5 : vector<8x16xi1>, vector<8x16xf32>
    %cst_6 = arith.constant dense<0xFF800000> : vector<8xf32>
    %23 = vector.multi_reduction <maximumf>, %22, %cst_6 [1] : vector<8x16xf32> to vector<8xf32>
    %24 = vector.shape_cast %23 : vector<8xf32> to vector<8x1xf32>
    %c0_7 = arith.constant 0 : index
    %c0_8 = arith.constant 0 : index
    %25 = vector.load %arg6[%c0_7, %c0_8] : memref<8x1xf32, #tpu.memory_space<vmem>>, vector<8x1xf32>
    %26 = arith.maximumf %25, %24 : vector<8x1xf32>
    %c0_9 = arith.constant 0 : index
    %c0_10 = arith.constant 0 : index
    %27 = vector.load %arg6[%c0_9, %c0_10] : memref<8x1xf32, #tpu.memory_space<vmem>>, vector<8x1xf32>
    %28 = arith.subf %27, %26 : vector<8x1xf32>
    %29 = math.exp %28 : vector<8x1xf32>
    %c0_11 = arith.constant 0 : index
    %c0_12 = arith.constant 0 : index
    %30 = vector.load %arg7[%c0_11, %c0_12] : memref<8x1xf32, #tpu.memory_space<vmem>>, vector<8x1xf32>
    %31 = arith.mulf %30, %29 : vector<8x1xf32>
    %32 = vector.broadcast %26 : vector<8x1xf32> to vector<8x16xf32>
    %33 = arith.subf %22, %32 : vector<8x16xf32>
    %34 = math.exp %33 : vector<8x16xf32>
    %cst_13 = arith.constant dense<0.000000e+00> : vector<8xf32>
    %35 = vector.multi_reduction <add>, %34, %cst_13 [1] : vector<8x16xf32> to vector<8xf32>
    %36 = vector.shape_cast %35 : vector<8xf32> to vector<8x1xf32>
    %37 = arith.addf %31, %36 : vector<8x1xf32>
    %c0_14 = arith.constant 0 : index
    %c0_15 = arith.constant 0 : index
    %38 = vector.load %arg7[%c0_14, %c0_15] : memref<8x1xf32, #tpu.memory_space<vmem>>, vector<8x1xf32>
    tpu.vector_store %arg7[%c0_14, %c0_15], %37 {strides = array<i32>} : memref<8x1xf32, #tpu.memory_space<vmem>>, vector<8x1xf32>,
    %c0_16 = arith.constant 0 : index
    %c0_17 = arith.constant 0 : index
    %39 = vector.load %arg6[%c0_16, %c0_17] : memref<8x1xf32, #tpu.memory_space<vmem>>, vector<8x1xf32>
    tpu.vector_store %arg6[%c0_16, %c0_17], %26 {strides = array<i32>} : memref<8x1xf32, #tpu.memory_space<vmem>>, vector<8x1xf32>,
    %c0_i32_18 = arith.constant 0 : i32
    %40 = arith.cmpi eq, %arg1, %c0_i32_18 : i32
    %41 = arith.extui %40 : i1 to i32
    %c0_i32_19 = arith.constant 0 : i32
    %42 = arith.cmpi ne, %41, %c0_i32_19 : i32
    scf.if %42 {
      %c0_20 = arith.constant 0 : index
      %c0_21 = arith.constant 0 : index
      %43 = vector.load %arg6[%c0_20, %c0_21] : memref<8x1xf32, #tpu.memory_space<vmem>>, vector<8x1xf32>
      %c0_22 = arith.constant 0 : index
      %c0_23 = arith.constant 0 : index
      %44 = vector.load %arg7[%c0_22, %c0_23] : memref<8x1xf32, #tpu.memory_space<vmem>>, vector<8x1xf32>
      %45 = math.log %44 : vector<8x1xf32>
      %46 = arith.addf %43, %45 : vector<8x1xf32>
      %c0_24 = arith.constant 0 : index
      %c0_25 = arith.constant 0 : index
      %47 = vector.load %arg4[%c0_24, %c0_25] : memref<8x1xf32, #tpu.memory_space<vmem>>, vector<8x1xf32>
      %48 = arith.subf %46, %47 : vector<8x1xf32>
      %c0_26 = arith.constant 0 : index
      %c0_27 = arith.constant 0 : index
      %49 = vector.load %arg5[%c0_26, %c0_27] : memref<8x1xf32, #tpu.memory_space<vmem>>, vector<8x1xf32>
      tpu.vector_store %arg5[%c0_26, %c0_27], %48 {strides = array<i32>} : memref<8x1xf32, #tpu.memory_space<vmem>>, vector<8x1xf32>,
    } else {
    }
    return
  }
  func.func @transform_0(%arg0: i32, %arg1: i32) -> (i32, i32) {
    %c0_i32 = arith.constant 0 : i32
    %c0_i32_0 = arith.constant 0 : i32
    return %arg0, %c0_i32 : i32, i32
  }
  func.func @transform_1(%arg0: i32, %arg1: i32) -> (i32, i32) {
    %c0_i32 = arith.constant 0 : i32
    %c0_i32_0 = arith.constant 0 : i32
    return %c0_i32, %arg1 : i32, i32
  }
  func.func @transform_2(%arg0: i32, %arg1: i32) -> (i32, i32) {
    %c0_i32 = arith.constant 0 : i32
    %c0_i32_0 = arith.constant 0 : i32
    return %arg0, %c0_i32 : i32, i32
  }
  func.func @transform_3(%arg0: i32, %arg1: i32) -> (i32, i32) {
    %c0_i32 = arith.constant 0 : i32
    %c0_i32_0 = arith.constant 0 : i32
    return %arg0, %c0_i32 : i32, i32
  }
}

</mosaic_0001>

<bundles_post_ra>
// kernel: tpu_custom_call.1
= control target key start
LH: loop header
LB: loop body
LE: loop exit
PB: predicated region body
PF: predicated region fallthrough
CT: control target
= control target key end

     0   :  { %s560_s12 = smov 0   ;;  %s562_s13 = smov 0   ;;  %s625_s0 = inlined_call_operand.vmem [shape: f32[16,32], index: 0, kind: input, shape index: {}]   ;;  %s626_s1 = inlined_call_operand.vmem [shape: f32[32,16], index: 1, kind: input, shape index: {}]   ;;  %s627_s2 = inlined_call_operand.vmem [shape: f32[16,1], index: 2, kind: input, shape index: {}]   ;;  %s628_s3 = inlined_call_operand.vmem [shape: f32[16,1], index: 3, kind: output, shape index: {}]  }
   0x1   :  { %s564_s14 = smov 0  }
   0x2 LB: > { %s25_s15 = sadd.s32 1, %s529_s13  ;;  %p445_p0 = scmp.ge.s32.totalorder %s533_s14, 1  ;;  %s533_s14 = sphi %s564_s14, %s13_s14   ;;  %s529_s13 = sphi %s562_s13, %s630_s13   ;;  %s525_s12 = sphi %s560_s12, %s629_s12  }
   0x3   : > { %p27_p1 = scmp.ge.s32.totalorder %s25_s15, 2  ;;  %p166_p2 = scmp.lt.s32.totalorder %s533_s14, 3 }
   0x5   : > { %s632_s15 = smov (%p27_p1, %s25_s15), 0  ;;  %p167_p3 = pnand %p445_p0, %p166_p2 }
   0x6   : > { %v220_v0 = vld [vmem:[%s626_s1] sm:$0xff] (!%p167_p3)  ;;  %v221_v1 = vld [vmem:[%s626_s1 + $0x8] sm:$0xff] (!%p167_p3)  ;;  %v222_v2 = vld [vmem:[%s626_s1 + $0x10] sm:$0xff] (!%p167_p3)  ;;  %vm216_vm0 = vcmask (!%p167_p3), 7168   ;;  %v535_v3 = vmov (!%p167_p3), 0.0|0.0   ;;  %v536_v6 = vmov (!%p167_p3), 0.0   ;;  %v298_v10 = vlaneseq (!%p167_p3) }
   0x7   : > { %170 = sbr.rel (%p167_p3) target bundleno = 691 (0x2b3), region = 32  ;;  %469 = vmatprep.subr.bf16.mxu0 (!%p167_p3), %v535_v3  ;;  %v470_v4 = vpack.c.bf16 (!%p167_p3), %v221_v1, %v220_v0  ;;  %v223_v5 = vld [vmem:[%s626_s1 + $0x18] sm:$0xff] (!%p167_p3)  ;;  %218 = vst.msk [vmem:[#allocation3] sm:$0xff] (!%p167_p3), %vm216_vm0, %v536_v6  ;;  %p196_p4 = scmp.lt.s32.totalorder (!%p167_p3), %s525_s12, 1  ;;  %vm537_vm1 = vmmov (!%p167_p3), 0   ;;  %vm224_vm2 = vcmask (!%p167_p3), 261120  }
   0x8   : > { %466 = vmatprep.mubr.msk.f32.mxu0 (!%p167_p3), %vm537_vm1, %v536_v6  ;;  %v473_v7 = vpack.c.bf16 (!%p167_p3), %v223_v5, %v222_v2  ;;  %v538_v9 = vmov (!%p167_p3), -inf   ;;  %s450_s29 = sshll.u32 (!%p167_p3), %s525_s12, 3  ;;  %v299_v11 = vshrl.u32 (!%p167_p3), %v298_v10, 7  ;;  %v304_v14 = vand.u32 (!%p167_p3), 127, %v298_v10 }
   0x9   : > { %471 = vmatpush3.bf16.msra.mxu0 (!%p167_p3), %v470_v4  ;;  %217 = vst.msk [vmem:[#allocation2] sm:$0xff] (!%p167_p3), %vm216_vm0, %v538_v9  ;;  %v301_v12 = vstv (!%p167_p3), %s450_s29  ;;  %vm314_vm6 = vcmask (!%p167_p3), 130048   ;;  %v539_v19 = vmov (!%p167_p3), 0  }
   0xa   : > { %472 = vmatprep.subr.bf16.mxu0 (!%p167_p3), %v535_v3  ;;  %v302_v13 = vadd.s32 (!%p167_p3), %v301_v12, %v299_v11  ;;  %vm309_vm4 = vcmp.ge.s32.totalorder (!%p167_p3), %v304_v14, 16  ;;  %504 = vset.pattern.permute.xlu0 (!%p167_p3), %v539_v19 }
   0xc   : > { %vm308_vm3 = vcmp.eq.s32.totalorder (!%p167_p3), %v302_v13, %v304_v14 }
   0xd   : > { %474 = vmatpush3.bf16.msra.mxu0 (!%p167_p3), %v473_v7  ;;  %vm312_vm5 = vmor (!%p167_p3), %vm308_vm3, %vm309_vm4 }
   0xe   : > { %s197_s24 = scalar_select %p196_p4, %s525_s12, 1  ;;  %v323_v31 = vld [vmem:[#allocation3] sm:$0xff] }
  0x10   : > { %s595_s25 = sshll.u32 %s197_s24, 3  ;;  %v318_v20 = vld [vmem:[#allocation2] sm:$0xff] }
  0x11   : > { %s199_s28 = scalar_lea.vmem %s625_s0, %s595_s25  ;;  %s207_s5 = scalar_lea.vmem %s627_s2, %s595_s25 }
  0x12   : > { %v219_v8 = vld [vmem:[%s199_s28] sm:$0xff]  ;;  %s211_s8 = scalar_lea.vmem %s628_s3, %s595_s25 }
  0x13   : > { %467 = vmatmul.mubr.msk.f32.vlgmr.msra.gmra.mrb[0].mxu0 %vm224_vm2, %v219_v8  ;;  %v348_v38 = vld [vmem:[%s207_s5] sm:$0xff] }
  0xe6   : > { %v294_v15 = vpop.f32.mrb[0].mxu0 }
  0xe7   : > { %v313_v16 = vsel %vm312_vm5, -1e+30, %v294_v15  ;;  %v468_v17 = vpop.f32.mrb[1].mxu0 }
  0xe8   : > { %v315_v18 = vsel %vm314_vm6, %v313_v16, -inf }
  0xe9   : > { %316 = vmax.xlane.f32.xlu0 %v315_v18 }
 0x176   : > { %v317_v21 = vpop.xlane.xlu0 %316 }
 0x177   : > { %v319_v22 = vmax.f32 %v318_v20, %v317_v21 }
 0x179   : > { %v320_v23 = vsub.f32 %v318_v20, %v319_v22  ;;  %339 = vst.msk [vmem:[#allocation2] sm:$0xff] %vm216_vm0, %v319_v22  ;;  %327 = vperm.xlu0 %504, %v319_v22  }
 0x17b   : > { %v321_v29 = vmul.f32 1.442695, %v320_v23 }
 0x180   : > { %v343_v39 = vld [vmem:[#allocation2] sm:$0xff] }
 0x1f8   : > { %v328_v24 = vpop.permute.xlu0 %327 }
 0x1f9   : > { %v330_v25 = vsub.f32 %v313_v16, %v328_v24 }
 0x1fb   : > { %v331_v26 = vmul.f32 1.442695, %v330_v25 }
 0x1fd   : > { %505 = vpow2.f32 %v331_v26 }
 0x1fe   : > { %507 = vpow2.f32 %v321_v29 }
 0x207   : > { %v506_v27 = vpop.eup %505 }
 0x208   : > { %v333_v28 = vsel %vm314_vm6, %v506_v27, 0.0  ;;  %v508_v30 = vpop.eup %507 }
 0x209   : > { %334 = vadd.xlane.f32.xlu1 %v333_v28  ;;  %v324_v32 = vmul.f32 %v508_v30, %v323_v31 }
 0x296   : > { %v335_v33 = vpop.xlane.xlu1 %334 }
 0x297   : > { %v336_v34 = vadd.f32 %v335_v33, %v324_v32 }
 0x299   : > { %338 = vst.msk [vmem:[#allocation3] sm:$0xff] %vm216_vm0, %v336_v34 }
 0x2a0   : > { %v344_v35 = vld [vmem:[#allocation3] sm:$0xff] }
 0x2a1   : > { %509 = vlog2.f32 %v344_v35 }
 0x2ab   : > { %v510_v36 = vpop.eup %509 }
 0x2ac   : > { %v346_v37 = vmul.f32 0.6931472, %v510_v36 }
 0x2ae   : > { %v347_v40 = vadd.f32 %v346_v37, %v343_v39 }
 0x2b0   : > { %v349_v41 = vsub.f32 %v347_v40, %v348_v38 }
 0x2b2   : > { %350 = vst.msk [vmem:[%s211_s8] sm:$0xff] %vm216_vm0, %v349_v41 }
 0x2b3 PF: > { %s13_s14 = sadd.s32 1, %s533_s14   ;;  %s629_s12 = smov %s529_s13 }
 0x2b4   : > { %p10_p5 = scmp.ge.s32.totalorder %s13_s14, 4   ;;  %s630_s13 = smov %s632_s15 }
 0x2b6   :  { %12 = sbr.rel (!%p10_p5) target bundleno = 2 (0x2), region = 76 }

</bundles_post_ra>
